<compile_context>
chip_gen: v5e
topology: v5e:2x2
jax: 0.10.0
libtpu: 0.0.40
codegen_flags: <defaults>
</compile_context>

<pallas_src>
import functools

import jax
import jax.numpy as jnp
from jax import lax
from jax.experimental import pallas as pl
from jax.experimental.pallas import tpu as pltpu

BLOCK_SIZE = 64      # T
EMBEDDING_DIM = 128  # C
HEAD_SIZE = 32       # hs
DROPOUT = 0.2        # unused at inference time

_MASK_VALUE = -1e30  # finite "-inf": avoids inf-inf=NaN if ever reused with full masks


def _head_kernel(x_ref, wqkv_ref, o_ref, *, head_size):
    # x_ref:    (Bb, T, C)   float32
    # wqkv_ref: (C, 3*hs)    bfloat16   -- fused [k | q | v] projection weights
    # o_ref:    (Bb, T, hs)  float32
    Bb, T, C = x_ref.shape
    hs = head_size

    # ---- fused QKV projection: one (Bb*T, C) @ (C, 3*hs) MXU matmul --------
    x = x_ref[...].reshape(Bb * T, C).astype(jnp.bfloat16)
    wqkv = wqkv_ref[...]                                          # bf16
    qkv = jnp.dot(x, wqkv, preferred_element_type=jnp.float32)    # (Bb*T, 3*hs)

    k = qkv[:, 0 * hs:1 * hs].reshape(Bb, T, hs)
    q = qkv[:, 1 * hs:2 * hs].reshape(Bb, T, hs)
    v = qkv[:, 2 * hs:3 * hs].reshape(Bb, T, hs)

    # ---- scaled causal attention scores (batched, no explicit transpose) ---
    scale = hs ** -0.5
    scores = lax.dot_general(
        q.astype(jnp.bfloat16), k.astype(jnp.bfloat16),
        dimension_numbers=(((2,), (2,)), ((0,), (0,))),
        preferred_element_type=jnp.float32,
    ) * scale                                                     # (Bb, T, T)

    row = lax.broadcasted_iota(jnp.int32, (T, T), 0)
    col = lax.broadcasted_iota(jnp.int32, (T, T), 1)
    causal = col <= row
    scores = jnp.where(causal[None, :, :], scores, _MASK_VALUE)

    # ---- numerically stable softmax (kept in f32) --------------------------
    scores = scores - jnp.max(scores, axis=-1, keepdims=True)
    p = jnp.exp(scores)
    denom = jnp.sum(p, axis=-1, keepdims=True)
    p = p * pl.reciprocal(denom, approx=True)

    # Dropout: identity (eval-mode semantics)
    # TODO(synk): training-mode dropout (p=0.2) needs pltpu.prng_* + mask.

    # ---- weighted sum of values ---------------------------------------------
    out = lax.dot_general(
        p.astype(jnp.bfloat16), v.astype(jnp.bfloat16),
        dimension_numbers=(((2,), (1,)), ((0,), (0,))),
        preferred_element_type=jnp.float32,
    )                                                             # (Bb, T, hs)

    o_ref[...] = out.astype(o_ref.dtype)


def head_forward(x, w_key, w_query, w_value, *, batch_block=None):
    """x: (B, T, C) float32; w_*: (head_size, C), as in nn.Linear.weight (y = x @ W.T)."""
    B, T, C = x.shape
    hs = w_key.shape[0]

    # Fused [k | q | v] weight in kernel-friendly (C, 3*hs) layout, pre-cast
    # to bf16 (halves weight DMA, feeds the MXU directly).
    wqkv = jnp.concatenate([w_key.T, w_query.T, w_value.T], axis=1)
    wqkv = wqkv.astype(jnp.bfloat16)

    if batch_block is None:
        batch_block = B if B <= 8 else 8
    Bb = min(batch_block, B)
    grid = (pl.cdiv(B, Bb),)

    kernel = functools.partial(_head_kernel, head_size=hs)

    return pl.pallas_call(
        kernel,
        out_shape=jax.ShapeDtypeStruct((B, T, hs), x.dtype),
        grid_spec=pltpu.PrefetchScalarGridSpec(
            num_scalar_prefetch=0,
            grid=grid,
            in_specs=[
                pl.BlockSpec((Bb, T, C), lambda b: (b, 0, 0)),
                pl.BlockSpec((C, 3 * hs), lambda b: (0, 0)),
            ],
            out_specs=pl.BlockSpec((Bb, T, hs), lambda b: (b, 0, 0)),
        ),
        compiler_params=pltpu.CompilerParams(
            dimension_semantics=("parallel",),
        ),
    )(x, wqkv)


def _reference(x, w_key, w_query, w_value):
    """Pure-JAX f32 reference mirroring the PyTorch forward (eval mode)."""
    k = x @ w_key.T
    q = x @ w_query.T
    v = x @ w_value.T
    wei = (q @ jnp.swapaxes(k, -2, -1)) * (k.shape[-1] ** -0.5)
    T = x.shape[1]
    tril = jnp.tril(jnp.ones((T, T), dtype=bool))
    wei = jnp.where(tril, wei, -jnp.inf)
    wei = jax.nn.softmax(wei, axis=-1)
    return wei @ v


if __name__ == "__main__":
    B, T, C, hs = 2, BLOCK_SIZE, EMBEDDING_DIM, HEAD_SIZE

    key = jax.random.PRNGKey(0)
    kx, kk, kq, kv = jax.random.split(key, 4)

    x = jax.random.normal(kx, (B, T, C), dtype=jnp.float32)
    # Deterministic "Kaiming-ish" init for Linear weights: (head_size, C)
    w_key = jax.random.normal(kk, (hs, C), dtype=jnp.float32) * (C ** -0.5)
    w_query = jax.random.normal(kq, (hs, C), dtype=jnp.float32) * (C ** -0.5)
    w_value = jax.random.normal(kv, (hs, C), dtype=jnp.float32) * (C ** -0.5)

    out = jax.block_until_ready(head_forward(x, w_key, w_query, w_value))

    ref = _reference(x, w_key, w_query, w_value)
    assert out.shape == (B, T, hs)
    # bf16 MXU inputs with f32 accumulation -> mixed-precision tolerance.
    assert jnp.allclose(out, ref, atol=5e-2, rtol=5e-2), float(
        jnp.max(jnp.abs(out - ref)))

    print("KERNEL_OK")
</pallas_src>

<mosaic_0001>
module attributes {stable_mosaic.version = 11 : i64} {
  func.func @_head_kernel(%arg0: i32, %arg1: memref<2x64x128xf32, #tpu.memory_space<vmem>>, %arg2: memref<128x96xbf16, #tpu.memory_space<vmem>>, %arg3: memref<2x64x32xf32, #tpu.memory_space<vmem>>) attributes {dimension_semantics = [#tpu.dimension_semantics<parallel>], iteration_bounds = array<i64: 1>, scalar_prefetch = 0 : i64, scratch_operands = 0 : i64, tpu.core_type = #tpu.core_type<tc>, window_params = [{transform_indices = @transform_0, window_bounds = array<i64: 2, 64, 128>}, {pipeline_mode = #tpu.pipeline_mode<synchronous>, transform_indices = @transform_1, window_bounds = array<i64: 128, 96>}, {transform_indices = @transform_2, window_bounds = array<i64: 2, 64, 32>}]} {
    %c0 = arith.constant 0 : index
    %c0_0 = arith.constant 0 : index
    %c0_1 = arith.constant 0 : index
    %0 = vector.load %arg1[%c0, %c0_0, %c0_1] : memref<2x64x128xf32, #tpu.memory_space<vmem>>, vector<2x64x128xf32>
    %1 = vector.shape_cast %0 : vector<2x64x128xf32> to vector<128x128xf32>
    %2 = arith.truncf %1 : vector<128x128xf32> to vector<128x128xbf16>
    %c0_2 = arith.constant 0 : index
    %c0_3 = arith.constant 0 : index
    %3 = vector.load %arg2[%c0_2, %c0_3] : memref<128x96xbf16, #tpu.memory_space<vmem>>, vector<128x96xbf16>
    %cst = arith.constant dense<0.000000e+00> : vector<128x96xf32>
    %4 = tpu.matmul %2, %3, %cst {dimension_numbers = #tpu.dot_dimension_numbers<[1], [0], [0], [1], [0, 0, 1, 1], [], []>} : vector<128x128xbf16>, vector<128x96xbf16>, vector<128x96xf32> -> vector<128x96xf32>
    %5 = vector.extract_strided_slice %4 {offsets = [0, 0], sizes = [128, 32], strides = [1, 1]} : vector<128x96xf32> to vector<128x32xf32>
    %6 = vector.shape_cast %5 : vector<128x32xf32> to vector<2x64x32xf32>
    %7 = vector.extract_strided_slice %4 {offsets = [0, 32], sizes = [128, 32], strides = [1, 1]} : vector<128x96xf32> to vector<128x32xf32>
    %8 = vector.shape_cast %7 : vector<128x32xf32> to vector<2x64x32xf32>
    %9 = vector.extract_strided_slice %4 {offsets = [0, 64], sizes = [128, 32], strides = [1, 1]} : vector<128x96xf32> to vector<128x32xf32>
    %10 = vector.shape_cast %9 : vector<128x32xf32> to vector<2x64x32xf32>
    %11 = arith.truncf %8 : vector<2x64x32xf32> to vector<2x64x32xbf16>
    %12 = arith.truncf %6 : vector<2x64x32xf32> to vector<2x64x32xbf16>
    %cst_4 = arith.constant dense<0.000000e+00> : vector<2x64x64xf32>
    %13 = tpu.matmul %11, %12, %cst_4 {dimension_numbers = #tpu.dot_dimension_numbers<[2], [2], [1], [1], [0, 0, 0, 1, 1, 1], [0], [0]>} : vector<2x64x32xbf16>, vector<2x64x32xbf16>, vector<2x64x64xf32> -> vector<2x64x64xf32>
    %cst_5 = arith.constant 0.176776692 : f32
    %14 = vector.broadcast %cst_5 : f32 to vector<2x64x64xf32>
    %15 = arith.mulf %13, %14 : vector<2x64x64xf32>
    %16 = tpu.iota {dimensions = array<i32: 0>} : vector<64x64xi32>
    %17 = tpu.iota {dimensions = array<i32: 1>} : vector<64x64xi32>
    %18 = arith.cmpi sle, %17, %16 : vector<64x64xi32>
    %19 = vector.shape_cast %18 : vector<64x64xi1> to vector<1x64x64xi1>
    %cst_6 = arith.constant -1.000000e+30 : f32
    %20 = vector.shape_cast %19 : vector<1x64x64xi1> to vector<1x64x64xi1>
    %21 = vector.broadcast %20 : vector<1x64x64xi1> to vector<2x64x64xi1>
    %22 = vector.broadcast %cst_6 : f32 to vector<2x64x64xf32>
    %23 = arith.select %21, %15, %22 : vector<2x64x64xi1>, vector<2x64x64xf32>
    %cst_7 = arith.constant dense<0xFF800000> : vector<2x64xf32>
    %24 = vector.multi_reduction <maximumf>, %23, %cst_7 [2] : vector<2x64x64xf32> to vector<2x64xf32>
    %25 = vector.shape_cast %24 : vector<2x64xf32> to vector<2x64x1xf32>
    %26 = vector.broadcast %25 : vector<2x64x1xf32> to vector<2x64x64xf32>
    %27 = arith.subf %23, %26 : vector<2x64x64xf32>
    %28 = math.exp %27 : vector<2x64x64xf32>
    %cst_8 = arith.constant dense<0.000000e+00> : vector<2x64xf32>
    %29 = vector.multi_reduction <add>, %28, %cst_8 [2] : vector<2x64x64xf32> to vector<2x64xf32>
    %30 = vector.shape_cast %29 : vector<2x64xf32> to vector<2x64x1xf32>
    %31 = tpu.reciprocal %30 {approx = true} : vector<2x64x1xf32> -> vector<2x64x1xf32>
    %32 = vector.broadcast %31 : vector<2x64x1xf32> to vector<2x64x64xf32>
    %33 = arith.mulf %28, %32 : vector<2x64x64xf32>
    %34 = arith.truncf %33 : vector<2x64x64xf32> to vector<2x64x64xbf16>
    %35 = arith.truncf %10 : vector<2x64x32xf32> to vector<2x64x32xbf16>
    %cst_9 = arith.constant dense<0.000000e+00> : vector<2x64x32xf32>
    %36 = tpu.matmul %34, %35, %cst_9 {dimension_numbers = #tpu.dot_dimension_numbers<[2], [1], [1], [2], [0, 0, 0, 1, 1, 2], [0], [0]>} : vector<2x64x64xbf16>, vector<2x64x32xbf16>, vector<2x64x32xf32> -> vector<2x64x32xf32>
    %c0_10 = arith.constant 0 : index
    %c0_11 = arith.constant 0 : index
    %c0_12 = arith.constant 0 : index
    %37 = vector.load %arg3[%c0_10, %c0_11, %c0_12] : memref<2x64x32xf32, #tpu.memory_space<vmem>>, vector<2x64x32xf32>
    tpu.vector_store %arg3[%c0_10, %c0_11, %c0_12], %36 {strides = array<i32>} : memref<2x64x32xf32, #tpu.memory_space<vmem>>, vector<2x64x32xf32>,
    return
  }
  func.func @transform_0(%arg0: i32) -> (i32, i32, i32) {
    %c0_i32 = arith.constant 0 : i32
    %c0_i32_0 = arith.constant 0 : i32
    %c0_i32_1 = arith.constant 0 : i32
    return %arg0, %c0_i32, %c0_i32_0 : i32, i32, i32
  }
  func.func @transform_1(%arg0: i32) -> (i32, i32) {
    %c0_i32 = arith.constant 0 : i32
    %c0_i32_0 = arith.constant 0 : i32
    %c0_i32_1 = arith.constant 0 : i32
    return %c0_i32, %c0_i32_0 : i32, i32
  }
  func.func @transform_2(%arg0: i32) -> (i32, i32, i32) {
    %c0_i32 = arith.constant 0 : i32
    %c0_i32_0 = arith.constant 0 : i32
    %c0_i32_1 = arith.constant 0 : i32
    return %arg0, %c0_i32, %c0_i32_0 : i32, i32, i32
  }
}

</mosaic_0001>

<bundles_post_ra>
// kernel: tpu_custom_call.1
= control target key start
LH: loop header
LB: loop body
LE: loop exit
PB: predicated region body
PF: predicated region fallthrough
CT: control target
= control target key end

     0   :  { %7 = vsyncpa [#allocation3], 0  ;;  %s934_s12 = smov [#allocation2]   ;;  %s935_s14 = smov 128   ;;  %s1332_s0 = inlined_call_operand.hbm [shape: f32[2,64,128], index: 0, kind: input, shape index: {}]   ;;  %s1333_s1 = inlined_call_operand.vmem [shape: bf16[128,96], index: 1, kind: input, shape index: {}]   ;;  %s1334_s2 = inlined_call_operand.vmem [shape: f32[2,64,32], index: 2, kind: output, shape index: {}]  }
   0x1   :  { %s12_s11 = sshll.u32 %s1332_s0, 4  ;;  %s14_s13 = sshll.u32 %s934_s12, 4  ;;  %s13_s11 = int_to_ptr.hbm [resolvable:$true] %s12_s11  ;;  %s15_s13 = int_to_ptr.vmem [resolvable:$true] %s14_s13 }
   0x2   :  { %s936_s15 = smov 8  }
   0x3   :  { %20 = dma.hbm_to_vmem [thread:$0]  %s13_s11, 2048, %s15_s13, [#allocation3], %s935_s14, %s935_s14, %s936_s15  }
   0x4   :  { %932 = dma.done.wait [#allocation3], 2048  }
   0x5   :  { %933 = vsyncadd [#allocation3], 4294965248  ;;  %v826_v0 = vld [vmem:[%s1333_s1 + $0x38] sm:$0xff]  ;;  %v825_v1 = vld [vmem:[%s1333_s1 + $0x30] sm:$0xff]  ;;  %s938_s3 = smov 64   ;;  %vm209_vm0 = vcmask 261120  }
   0x6   :  { %116 = vmatpush.bf16.msra.mxu0 %v826_v0  ;;  %827 = vmatpush.bf16.msra.mxu1 %v826_v0  ;;  %v824_v2 = vld [vmem:[%s1333_s1 + $0x28] sm:$0xff]  ;;  %v823_v3 = vld [vmem:[%s1333_s1 + $0x20] sm:$0xff]  ;;  %v822_v4 = vld [vmem:[%s1333_s1 + $0x18] sm:$0xff]  ;;  %vm411_vm2 = vcmask 523264  }
   0x7   :  { %v821_v5 = vld [vmem:[%s1333_s1 + $0x10] sm:$0xff]  ;;  %v820_v6 = vld [vmem:[%s1333_s1 + $0x8] sm:$0xff]  ;;  %v819_v7 = vld [vmem:[%s1333_s1] sm:$0xff]  ;;  %s937_s1 = smov 96  }
   0x8   :  { %v28_v8 = vld [vmem:[#allocation2] sm:$0xff]  ;;  %v29_v9 = vld [vmem:[#allocation2 + $0x8] sm:$0xff]  ;;  %v30_v14 = vld [vmem:[#allocation2 + $0x10] sm:$0xff] }
   0x9   :  { %v40_v10 = vld [vmem:[#allocation2 + $0x60] sm:$0xff]  ;;  %v41_v11 = vld [vmem:[#allocation2 + $0x68] sm:$0xff]  ;;  %v44_v12 = vpack.c.bf16 %v29_v9, %v28_v8  ;;  %v31_v15 = vld [vmem:[#allocation2 + $0x18] sm:$0xff] }
   0xa   :  { %117 = vmatpush.bf16.msra.mxu0 %v825_v1  ;;  %828 = vmatpush.bf16.msra.mxu1 %v825_v1  ;;  %v50_v13 = vpack.c.bf16 %v41_v11, %v40_v10  ;;  %v45_v16 = vpack.c.bf16 %v31_v15, %v30_v14  ;;  %v42_v17 = vld [vmem:[#allocation2 + $0x70] sm:$0xff]  ;;  %v43_v18 = vld [vmem:[#allocation2 + $0x78] sm:$0xff]  ;;  %v32_v20 = vld [vmem:[#allocation2 + $0x20] sm:$0xff] }
   0xb   :  { %v51_v19 = vpack.c.bf16 %v43_v18, %v42_v17  ;;  %v33_v21 = vld [vmem:[#allocation2 + $0x28] sm:$0xff]  ;;  %v34_v23 = vld [vmem:[#allocation2 + $0x30] sm:$0xff]  ;;  %v35_v24 = vld [vmem:[#allocation2 + $0x38] sm:$0xff] }
   0xc   :  { %v46_v22 = vpack.c.bf16 %v33_v21, %v32_v20  ;;  %v47_v25 = vpack.c.bf16 %v35_v24, %v34_v23  ;;  %v36_v26 = vld [vmem:[#allocation2 + $0x40] sm:$0xff]  ;;  %v37_v27 = vld [vmem:[#allocation2 + $0x48] sm:$0xff]  ;;  %v38_v29 = vld [vmem:[#allocation2 + $0x50] sm:$0xff] }
   0xd   :  { %v48_v28 = vpack.c.bf16 %v37_v27, %v36_v26  ;;  %v39_v30 = vld [vmem:[#allocation2 + $0x58] sm:$0xff] }
   0xe   :  { %118 = vmatpush.bf16.msra.mxu0 %v824_v2  ;;  %829 = vmatpush.bf16.msra.mxu1 %v824_v2  ;;  %v49_v31 = vpack.c.bf16 %v39_v30, %v38_v29 }
  0x12   :  { %119 = vmatpush.bf16.msra.mxu0 %v823_v3  ;;  %830 = vmatpush.bf16.msra.mxu1 %v823_v3 }
  0x16   :  { %120 = vmatpush.bf16.msra.mxu0 %v822_v4  ;;  %831 = vmatpush.bf16.msra.mxu1 %v822_v4 }
  0x1a   :  { %121 = vmatpush.bf16.msra.mxu0 %v821_v5  ;;  %832 = vmatpush.bf16.msra.mxu1 %v821_v5 }
  0x1e   :  { %122 = vmatpush.bf16.msra.mxu0 %v820_v6  ;;  %833 = vmatpush.bf16.msra.mxu1 %v820_v6 }
  0x22   :  { %123 = vmatpush.bf16.msra.mxu0 %v819_v7  ;;  %834 = vmatpush.bf16.msra.mxu1 %v819_v7 }
  0x25   :  { %124 = vmatmul.bf16.vlgmr.msra.gmra.mxu0 %v44_v12  ;;  %154 = vmatmul.bf16.vlgmr.msra.gmra.mxu1 %v50_v13 }
  0x35   :  { %129 = vmatmul.bf16.gmra.mxu0 %v45_v16  ;;  %159 = vmatmul.bf16.gmra.mxu1 %v51_v19 }
  0x45   :  { %134 = vmatmul.bf16.gmra.mxu0 %v46_v22 }
  0x55   :  { %139 = vmatmul.bf16.gmra.mxu0 %v47_v25 }
  0x65   :  { %144 = vmatmul.bf16.gmra.mxu0 %v48_v28 }
  0x75   :  { %149 = vmatmul.bf16.gmra.mxu0 %v49_v31 }
  0xa2   :  { %v125_v32 = vpop.f32.mrf.mxu0  ;;  %v155_v39 = vpop.f32.mrf.mxu1 }
  0xa3   :  { %v165_v33 = vpack.c.bf16 %v125_v32, %v125_v32  ;;  %v177_v47 = vpack.c.bf16 %v155_v39, %v155_v39 }
  0xa5   :  { %v189_v36 = vunpack.c.l.b16 %v165_v33  ;;  %v275_v50 = vunpack.c.l.b16 %v177_v47 }
  0xaa   :  { %v127_v34 = vpop.f32.mrf.mxu0  ;;  %v157_v43 = vpop.f32.mrf.mxu1 }
  0xab   :  { %v166_v35 = vpack.c.bf16 %v127_v34, %v127_v34  ;;  %v178_v48 = vpack.c.bf16 %v157_v43, %v157_v43 }
  0xad   :  { %v190_v37 = vunpack.c.l.b16 %v166_v35  ;;  %v276_v51 = vunpack.c.l.b16 %v178_v48 }
  0xaf   :  { %v981_v38 = vpack.c.b16 %v190_v37, %v189_v36  ;;  %v986_v53 = vpack.c.b16 %v276_v51, %v275_v50 }
  0xb1   :  { %201 = vrot.lane.b32.xlu0 %v981_v38, %s937_s1  ;;  %v310_v15 = vsel %vm209_vm0, %v986_v53, 0  ;;  %v223_v24 = vsel %vm209_vm0, %v981_v38, 0 }
  0xb2   :  { %v130_v40 = vpop.f32.mrf.mxu0  ;;  %v160_v56 = vpop.f32.mrf.mxu1 }
  0xb3   :  { %v167_v41 = vpack.c.bf16 %v130_v40, %v130_v40  ;;  %v179_v0 = vpack.c.bf16 %v160_v56, %v160_v56 }
  0xb5   :  { %v191_v45 = vunpack.c.l.b16 %v167_v41  ;;  %v277_v5 = vunpack.c.l.b16 %v179_v0 }
  0xba   :  { %v132_v42 = vpop.f32.mrf.mxu0  ;;  %v162_v62 = vpop.f32.mrf.mxu1 }
  0xbb   :  { %v168_v44 = vpack.c.bf16 %v132_v42, %v132_v42  ;;  %v180_v1 = vpack.c.bf16 %v162_v62, %v162_v62 }
  0xbd   :  { %v192_v46 = vunpack.c.l.b16 %v168_v44  ;;  %v278_v6 = vunpack.c.l.b16 %v180_v1 }
  0xbf   :  { %v198_v49 = vpack.c.b16 %v192_v46, %v191_v45  ;;  %v992_v9 = vpack.c.b16 %v278_v6, %v277_v5  ;;  %v360_v45 = vlaneseq }
  0xc1   :  { %203 = vrot.lane.b32.xlu0 %v198_v49, %s937_s1  ;;  %v313_v11 = vsel %vm209_vm0, %v992_v9, 0  ;;  %v226_v21 = vsel %vm209_vm0, %v198_v49, 0  ;;  %v1028_v47 = vshrl.u32 %v360_v45, 7 }
  0xc2   :  { %v135_v52 = vpop.f32.mrf.mxu0  ;;  %319 = vmatpush.bf16.xpose.msra.mxu2 %v313_v11 }
  0xc3   :  { %v169_v54 = vpack.c.bf16 %v135_v52, %v135_v52  ;;  %v1031_v48 = vadd.s32 16, %v1028_v47  ;;  %v362_v52 = vadd.s32 8, %v1028_v47  ;;  %v364_v56 = vadd.s32 24, %v1028_v47 }
  0xc4   :  { %v365_v0 = vadd.s32 32, %v1028_v47 }
  0xc5   :  { %v193_v58 = vunpack.c.l.b16 %v169_v54 }
  0xc9   :  { %287 = vrot.lane.b32.xlu0 %v986_v53, %s937_s1 }
  0xca   :  { %v137_v55 = vpop.f32.mrf.mxu0  ;;  %320 = vmatpush.bf16.xpose.msra.mxu2 %v310_v15 }
  0xcb   :  { %v170_v57 = vpack.c.bf16 %v137_v55, %v137_v55 }
  0xcd   :  { %v194_v59 = vunpack.c.l.b16 %v170_v57 }
  0xcf   :  { %v199_v60 = vpack.c.b16 %v194_v59, %v193_v58 }
  0xd1   :  { %628 = vrot.lane.b32.xlu0 %v199_v60, %s938_s3  ;;  %205 = vrot.lane.b32.xlu1 %v199_v60, %s937_s1  ;;  %v229_v14 = vsel %vm209_vm0, %v199_v60, 0 }
  0xd2   :  { %v140_v61 = vpop.f32.mrf.mxu0 }
  0xd3   :  { %v171_v63 = vpack.c.bf16 %v140_v61, %v140_v61 }
  0xd5   :  { %v195_v3 = vunpack.c.l.b16 %v171_v63 }
  0xda   :  { %v142_v2 = vpop.f32.mrf.mxu0 }
  0xdb   :  { %v172_v4 = vpack.c.bf16 %v142_v2, %v142_v2 }
  0xdd   :  { %v196_v7 = vunpack.c.l.b16 %v172_v4 }
  0xdf   :  { %v200_v8 = vpack.c.b16 %v196_v7, %v195_v3 }
  0xe1   :  { %207 = vrot.lane.b32.xlu1 %v200_v8, %s937_s1  ;;  %v232_v10 = vsel %vm209_vm0, %v200_v8, 0 }
  0xe2   :  { %v145_v12 = vpop.f32.mrf.mxu0  ;;  %238 = vmatpush.bf16.xpose.msrb.mxu1 %v232_v10 }
  0xe3   :  { %v173_v13 = vpack.c.bf16 %v145_v12, %v145_v12 }
  0xe5   :  { %v271_v17 = vunpack.c.l.b16 %v173_v13 }
  0xe9   :  { %289 = vrot.lane.b32.xlu1 %v992_v9, %s937_s1 }
  0xea   :  { %v147_v16 = vpop.f32.mrf.mxu0  ;;  %239 = vmatpush.bf16.xpose.msrb.mxu1 %v229_v14  ;;  %v367_v14 = vadd.s32 48, %v1028_v47 }
  0xeb   :  { %v174_v18 = vpack.c.bf16 %v147_v16, %v147_v16 }
  0xed   :  { %v272_v19 = vunpack.c.l.b16 %v174_v18 }
  0xef   :  { %v1003_v20 = vpack.c.b16 %v272_v19, %v271_v17 }
  0xf1   :  { %626 = vrot.lane.b32.xlu1 %v198_v49, %s938_s3  ;;  %283 = vrot.lane.b32.xlu2 %v1003_v20, %s937_s1  ;;  %v304_v31 = vsel %vm209_vm0, %v1003_v20, 0  ;;  %v1033_v49 = vand.u32 127, %v360_v45 }
  0xf2   :  { %v150_v22 = vpop.f32.mrf.mxu0  ;;  %240 = vmatpush.bf16.xpose.msrb.mxu1 %v226_v21 }
  0xf3   :  { %v175_v23 = vpack.c.bf16 %v150_v22, %v150_v22  ;;  %vm373_vm1 = vcmp.le.s32.totalorder %v1033_v49, %v1031_v48  ;;  %vm372_vm3 = vcmp.le.s32.totalorder %v1033_v49, %v362_v52  ;;  %vm374_vm4 = vcmp.le.s32.totalorder %v1033_v49, %v364_v56 }
  0xf4   :  { %vm371_vm5 = vcmp.le.s32.totalorder %v1033_v49, %v1028_v47  ;;  %vm375_vm6 = vcmp.le.s32.totalorder %v1033_v49, %v365_v0  ;;  %vm377_vm8 = vcmp.le.s32.totalorder %v1033_v49, %v367_v14 }
  0xf5   :  { %v273_v26 = vunpack.c.l.b16 %v175_v23 }
  0xfa   :  { %v152_v25 = vpop.f32.mrf.mxu0  ;;  %241 = vmatpush.bf16.xpose.msrb.mxu1 %v223_v24 }
  0xfb   :  { %v176_v27 = vpack.c.bf16 %v152_v25, %v152_v25 }
  0xfd   :  { %v274_v28 = vunpack.c.l.b16 %v176_v27 }
  0xff   :  { %v1011_v29 = vpack.c.b16 %v274_v28, %v273_v26 }
 0x101   :  { %285 = vrot.lane.b32.xlu2 %v1011_v29, %s937_s1  ;;  %v307_v30 = vsel %vm209_vm0, %v1011_v29, 0 }
 0x102   :  { %321 = vmatpush.bf16.xpose.msra.mxu2 %v307_v30 }
 0x109   :  { %630 = vrot.lane.b32.xlu2 %v200_v8, %s938_s3  ;;  %v366_v8 = vadd.s32 40, %v1028_v47 }
 0x10a   :  { %322 = vmatpush.bf16.xpose.msra.mxu2 %v304_v31 }
 0x10b   :  { %vm376_vm7 = vcmp.le.s32.totalorder %v1033_v49, %v366_v8 }
 0x123   :  { %v202_v32 = vpop.permute.xlu0 %201 }
 0x124   :  { %803 = vmatmul.msk.bf16.vlgmr.msrb.gmra.mxu1 %vm209_vm0, %v202_v32 }
 0x133   :  { %v204_v33 = vpop.permute.xlu0 %203 }
 0x134   :  { %804 = vmatmul.msk.bf16.gmra.mxu1 %vm209_vm0, %v204_v33 }
 0x13b   :  { %v288_v39 = vpop.permute.xlu0 %287 }
 0x143   :  { %v206_v34 = vpop.permute.xlu1 %205  ;;  %v629_v42 = vpop.permute.xlu0 %628 }
 0x144   :  { %805 = vmatmul.msk.bf16.gmra.mxu1 %vm209_vm0, %v206_v34  ;;  %v368_v34 = vadd.s32 56, %v1028_v47 }
 0x146   :  { %vm378_vm9 = vcmp.le.s32.totalorder %v1033_v49, %v368_v34 }
 0x14b   :  { %v284_v35 = vpop.permute.xlu2 %283 }
 0x14c   :  { %807 = vmatmul.msk.bf16.vlgmr.msra.gmra.mxu2 %vm209_vm0, %v284_v35 }
 0x153   :  { %v208_v36 = vpop.permute.xlu1 %207 }
 0x154   :  { %806 = vmatmul.msk.bf16.gmra.mxu1 %vm209_vm0, %v208_v36 }
 0x15b   :  { %v286_v37 = vpop.permute.xlu2 %285  ;;  %v290_v40 = vpop.permute.xlu1 %289 }
 0x15c   :  { %808 = vmatmul.msk.bf16.gmra.mxu2 %vm209_vm0, %v286_v37 }
 0x163   :  { %v631_v41 = vpop.permute.xlu2 %630  ;;  %v627_v43 = vpop.permute.xlu1 %626 }
 0x164   :  { %652 = vmatpush.bf16.msrb.mxu2 %v631_v41  ;;  %835 = vmatpush.bf16.msra.mxu3 %v631_v41 }
 0x168   :  { %653 = vmatpush.bf16.msrb.mxu2 %v629_v42  ;;  %836 = vmatpush.bf16.msra.mxu3 %v629_v42 }
 0x16c   :  { %809 = vmatmul.msk.bf16.gmra.mxu2 %vm209_vm0, %v288_v39  ;;  %837 = vmatpush.bf16.msra.mxu3 %v627_v43 }
 0x16d   :  { %654 = vmatpush.bf16.msrb.mxu2 %v627_v43 }
 0x17c   :  { %810 = vmatmul.msk.bf16.gmra.mxu2 %vm209_vm0, %v290_v40 }
 0x1a1   :  { %v243_v44 = vpop.f32.mrf.mxu1 }
 0x1a2   :  { %v344_v1 = vmul.f32 0.17677669, %v243_v44 }
 0x1a4   :  { %v1067_v4 = vsel %vm371_vm5, %v344_v1, -1e+30 }
 0x1a5   :  { %v412_v6 = vsel %vm411_vm2, %v1067_v4, -inf }
 0x1a9   :  { %v245_v46 = vpop.f32.mrf.mxu1 }
 0x1aa   :  { %v345_v57 = vmul.f32 0.17677669, %v245_v46 }
 0x1ac   :  { %v1050_v60 = vsel %vm372_vm3, %v345_v57, -1e+30 }
 0x1ad   :  { %v415_v63 = vsel %vm411_vm2, %v1050_v60, -inf }
 0x1b1   :  { %v248_v50 = vpop.f32.mrf.mxu1 }
 0x1b2   :  { %v346_v51 = vmul.f32 0.17677669, %v248_v50 }
 0x1b4   :  { %v1041_v54 = vsel %vm373_vm1, %v346_v51, -1e+30 }
 0x1b5   :  { %v418_v55 = vsel %vm411_vm2, %v1041_v54, -inf }
 0x1b6   :  { %419 = vmax.xlane.f32.xlu2 %v418_v55 }
 0x1b9   :  { %v250_v58 = vpop.f32.mrf.mxu1 }
 0x1ba   :  { %v347_v59 = vmul.f32 0.17677669, %v250_v58 }
 0x1bc   :  { %v1054_v61 = vsel %vm374_vm4, %v347_v59, -1e+30 }
 0x1bd   :  { %v421_v62 = vsel %vm411_vm2, %v1054_v61, -inf }
 0x1be   :  { %422 = vmax.xlane.f32.xlu0 %v421_v62  ;;  %416 = vmax.xlane.f32.xlu2 %v415_v63 }
 0x1c1   :  { %v253_v2 = vpop.f32.mrf.mxu1 }
 0x1c2   :  { %v348_v3 = vmul.f32 0.17677669, %v253_v2 }
 0x1c4   :  { %v1071_v5 = vsel %vm375_vm6, %v348_v3, -1e+30 }
 0x1c5   :  { %v424_v7 = vsel %vm411_vm2, %v1071_v5, -inf }
 0x1c6   :  { %413 = vmax.xlane.f32.xlu0 %v412_v6  ;;  %425 = vmax.xlane.f32.xlu1 %v424_v7 }
 0x1c9   :  { %v255_v10 = vpop.f32.mrf.mxu1 }
 0x1ca   :  { %v349_v11 = vmul.f32 0.17677669, %v255_v10 }
 0x1cc   :  { %v1081_v12 = vsel %vm376_vm7, %v349_v11, -1e+30 }
 0x1cd   :  { %v427_v13 = vsel %vm411_vm2, %v1081_v12, -inf }
 0x1ce   :  { %428 = vmax.xlane.f32.xlu2 %v427_v13 }
 0x1cf   :  { %v324_v15 = vpop.f32.mrf.mxu2 }
 0x1d0   :  { %v352_v39 = vmul.f32 0.17677669, %v324_v15 }
 0x1d1   :  { %v258_v16 = vpop.f32.mrf.mxu1 }
 0x1d2   :  { %v350_v17 = vmul.f32 0.17677669, %v258_v16  ;;  %v1126_v43 = vsel %vm371_vm5, %v352_v39, -1e+30 }
 0x1d3   :  { %v436_v46 = vsel %vm411_vm2, %v1126_v43, -inf }
 0x1d4   :  { %v1089_v18 = vsel %vm377_vm8, %v350_v17, -1e+30 }
 0x1d5   :  { %v430_v19 = vsel %vm411_vm2, %v1089_v18, -inf }
 0x1d6   :  { %431 = vmax.xlane.f32.xlu2 %v430_v19 }
 0x1d7   :  { %v326_v21 = vpop.f32.mrf.mxu2 }
 0x1d8   :  { %v353_v22 = vmul.f32 0.17677669, %v326_v21 }
 0x1d9   :  { %v260_v33 = vpop.f32.mrf.mxu1 }
 0x1da   :  { %703 = vrot.lane.b32.xlu0 %v992_v9, %s938_s3  ;;  %v1097_v23 = vsel %vm372_vm3, %v353_v22, -1e+30  ;;  %v351_v36 = vmul.f32 0.17677669, %v260_v33 }
 0x1db   :  { %v439_v24 = vsel %vm411_vm2, %v1097_v23, -inf }
 0x1dc   :  { %v1119_v37 = vsel %vm378_vm9, %v351_v36, -1e+30 }
 0x1dd   :  { %v433_v41 = vsel %vm411_vm2, %v1119_v37, -inf }
 0x1de   :  { %440 = vmax.xlane.f32.xlu2 %v439_v24 }
 0x1df   :  { %624 = vrot.lane.b32.xlu1 %v981_v38, %s938_s3  ;;  %v329_v25 = vpop.f32.mrf.mxu2 }
 0x1e0   :  { %v354_v40 = vmul.f32 0.17677669, %v329_v25 }
 0x1e2   :  { %v1131_v44 = vsel %vm373_vm1, %v354_v40, -1e+30 }
 0x1e3   :  { %v442_v50 = vsel %vm411_vm2, %v1131_v44, -inf }
 0x1e7   :  { %v331_v26 = vpop.f32.mrf.mxu2 }
 0x1e8   :  { %v355_v27 = vmul.f32 0.17677669, %v331_v26 }
 0x1ea   :  { %v1105_v28 = vsel %vm374_vm4, %v355_v27, -1e+30 }
 0x1eb   :  { %v445_v9 = vsel %vm411_vm2, %v1105_v28, -inf }
 0x1ec   :  { %446 = vmax.xlane.f32.xlu2 %v445_v9 }
 0x1ef   :  { %v334_v30 = vpop.f32.mrf.mxu2 }
 0x1f0   :  { %v356_v31 = vmul.f32 0.17677669, %v334_v30 }
 0x1f2   :  { %v1111_v32 = vsel %vm375_vm6, %v356_v31, -1e+30 }
 0x1f3   :  { %v448_v38 = vsel %vm411_vm2, %v1111_v32, -inf }
 0x1f4   :  { %449 = vmax.xlane.f32.xlu2 %v448_v38 }
 0x1f7   :  { %v336_v35 = vpop.f32.mrf.mxu2 }
 0x1f8   :  { %v357_v51 = vmul.f32 0.17677669, %v336_v35 }
 0x1fa   :  { %v1145_v48 = vsel %vm376_vm7, %v357_v51, -1e+30 }
 0x1fb   :  { %v451_v56 = vsel %vm411_vm2, %v1145_v48, -inf }
 0x1ff   :  { %v339_v42 = vpop.f32.mrf.mxu2 }
 0x200   :  { %v358_v45 = vmul.f32 0.17677669, %v339_v42 }
 0x202   :  { %v1139_v52 = vsel %vm377_vm8, %v358_v45, -1e+30 }
 0x203   :  { %v454_v47 = vsel %vm411_vm2, %v1139_v52, -inf }
 0x204   :  { %434 = vmax.xlane.f32.xlu0 %v433_v41 }
 0x207   :  { %v341_v55 = vpop.f32.mrf.mxu2 }
 0x208   :  { %v359_v57 = vmul.f32 0.17677669, %v341_v55 }
 0x209   :  { %437 = vmax.xlane.f32.xlu1 %v436_v46 }
 0x20a   :  { %v1151_v58 = vsel %vm378_vm9, %v359_v57, -1e+30 }
 0x20b   :  { %v457_v59 = vsel %vm411_vm2, %v1151_v58, -inf }
 0x20c   :  { %443 = vmax.xlane.f32.xlu0 %v442_v50 }
 0x211   :  { %455 = vmax.xlane.f32.xlu1 %v454_v47 }
 0x214   :  { %452 = vmax.xlane.f32.xlu0 %v451_v56 }
 0x21c   :  { %458 = vmax.xlane.f32.xlu0 %v457_v59 }
 0x229   :  { %v420_v62 = vpop.xlane.xlu2 %419 }
 0x22a   :  { %v462_v63 = vsub.f32 %v1041_v54, %v420_v62 }
 0x22c   :  { %v480_v0 = vmul.f32 1.442695, %v462_v63 }
 0x22e   :  { %844 = vpow2.f32 %v480_v0 }
 0x231   :  { %v423_v1 = vpop.xlane.xlu0 %422  ;;  %v1161_v7 = vpop.xlane.xlu2 %416 }
 0x232   :  { %v463_v2 = vsub.f32 %v1054_v61, %v423_v1 }
 0x234   :  { %v1157_v3 = vpop.eup %844  ;;  %v482_v6 = vmul.f32 1.442695, %v463_v2 }
 0x235   :  { %v514_v49 = vsel %vm411_vm2, %v1157_v3, 0.0 }
 0x236   :  { %846 = vpow2.f32 %v482_v6  ;;  %515 = vadd.xlane.f32.xlu0 %v514_v49 }
 0x239   :  { %v426_v8 = vpop.xlane.xlu1 %425  ;;  %v414_v19 = vpop.xlane.xlu0 %413 }
 0x23a   :  { %v464_v10 = vsub.f32 %v1071_v5, %v426_v8  ;;  %v460_v46 = vsub.f32 %v1067_v4, %v414_v19 }
 0x23c   :  { %v1164_v11 = vpop.eup %846  ;;  %v484_v54 = vmul.f32 1.442695, %v464_v10 }
 0x23d   :  { %v517_v13 = vsel %vm411_vm2, %v1164_v11, 0.0 }
 0x23e   :  { %518 = vadd.xlane.f32.xlu1 %v517_v13  ;;  %848 = vpow2.f32 %v484_v54 }
 0x241   :  { %v429_v61 = vpop.xlane.xlu2 %428 }
 0x242   :  { %v465_v14 = vsub.f32 %v1081_v12, %v429_v61 }
 0x244   :  { %v486_v15 = vmul.f32 1.442695, %v465_v14  ;;  %v1169_v16 = vpop.eup %848 }
 0x245   :  { %v520_v17 = vsel %vm411_vm2, %v1169_v16, 0.0 }
 0x246   :  { %850 = vpow2.f32 %v486_v15  ;;  %521 = vadd.xlane.f32.xlu1 %v520_v17 }
 0x249   :  { %v432_v5 = vpop.xlane.xlu2 %431 }
 0x24a   :  { %v466_v21 = vsub.f32 %v1089_v18, %v432_v5 }
 0x24c   :  { %v1174_v22 = vpop.eup %850  ;;  %v488_v24 = vmul.f32 1.442695, %v466_v21  ;;  %v704_v26 = vpop.permute.xlu0 %703 }
 0x24d   :  { %v523_v25 = vsel %vm411_vm2, %v1174_v22, 0.0 }
 0x24e   :  { %852 = vpow2.f32 %v488_v24  ;;  %524 = vadd.xlane.f32.xlu0 %v523_v25 }
 0x251   :  { %v625_v12 = vpop.permute.xlu1 %624  ;;  %v441_v18 = vpop.xlane.xlu2 %440 }
 0x252   :  { %655 = vmatpush.bf16.msrb.mxu2 %v625_v12  ;;  %838 = vmatpush.bf16.msra.mxu3 %v625_v12  ;;  %v469_v38 = vsub.f32 %v1097_v23, %v441_v18  ;;  %v461_v12 = vsub.f32 %v1050_v60, %v1161_v7 }
 0x254   :  { %v1178_v27 = vpop.eup %852  ;;  %v494_v36 = vmul.f32 1.442695, %v469_v38 }
 0x255   :  { %v526_v9 = vsel %vm411_vm2, %v1178_v27, 0.0 }
 0x256   :  { %725 = vmatpush.bf16.msrb.mxu3 %v704_v26  ;;  %527 = vadd.xlane.f32.xlu2 %v526_v9 }
 0x25f   :  { %v447_v30 = vpop.xlane.xlu2 %446 }
 0x260   :  { %v471_v34 = vsub.f32 %v1105_v28, %v447_v30 }
 0x262   :  { %697 = vrot.lane.b32.xlu0 %v1003_v20, %s938_s3  ;;  %v498_v41 = vmul.f32 1.442695, %v471_v34 }
 0x267   :  { %v450_v14 = vpop.xlane.xlu2 %449 }
 0x277   :  { %v435_v31 = vpop.xlane.xlu0 %434 }
 0x278   :  { %v467_v33 = vsub.f32 %v1119_v37, %v435_v31  ;;  %v476_v37 = vmul.f32 1.442695, %v460_v46 }
 0x27a   :  { %v490_v35 = vmul.f32 1.442695, %v467_v33 }
 0x27c   :  { %854 = vpow2.f32 %v490_v35  ;;  %v438_v39 = vpop.xlane.xlu1 %437 }
 0x27d   :  { %v468_v40 = vsub.f32 %v1126_v43, %v438_v39  ;;  %856 = vpow2.f32 %v494_v36 }
 0x27f   :  { %v492_v42 = vmul.f32 1.442695, %v468_v40  ;;  %v444_v45 = vpop.xlane.xlu0 %443 }
 0x280   :  { %v470_v54 = vsub.f32 %v1131_v44, %v444_v45 }
 0x281   :  { %858 = vpow2.f32 %v492_v42 }
 0x282   :  { %v1188_v20 = vpop.eup %854  ;;  %860 = vpow2.f32 %v498_v41  ;;  %v496_v17 = vmul.f32 1.442695, %v470_v54 }
 0x283   :  { %v529_v23 = vsel %vm411_vm2, %v1188_v20, 0.0  ;;  %v1193_v28 = vpop.eup %856  ;;  %862 = vpow2.f32 %v476_v37 }
 0x284   :  { %530 = vadd.xlane.f32.xlu1 %v529_v23  ;;  %v535_v4 = vsel %vm411_vm2, %v1193_v28, 0.0  ;;  %v456_v2 = vpop.xlane.xlu1 %455 }
 0x285   :  { %v474_v18 = vsub.f32 %v1139_v52, %v456_v2 }
 0x287   :  { %v1195_v50 = vpop.eup %858  ;;  %v453_v43 = vpop.xlane.xlu0 %452  ;;  %v504_v7 = vmul.f32 1.442695, %v474_v18 }
 0x288   :  { %v1197_v51 = vpop.eup %860  ;;  %v532_v47 = vsel %vm411_vm2, %v1195_v50, 0.0  ;;  %v473_v24 = vsub.f32 %v1145_v48, %v453_v43  ;;  %v478_v48 = vmul.f32 1.442695, %v461_v12 }
 0x289   :  { %533 = vadd.xlane.f32.xlu2 %v532_v47  ;;  %v541_v55 = vsel %vm411_vm2, %v1197_v51, 0.0  ;;  %v1205_v57 = vpop.eup %862 }
 0x28a   :  { %v508_v63 = vsel %vm411_vm2, %v1205_v57, 0.0 }
 0x28c   :  { %536 = vadd.xlane.f32.xlu1 %v535_v4  ;;  %542 = vadd.xlane.f32.xlu0 %v541_v55 }
 0x28f   :  { %v459_v56 = vpop.xlane.xlu0 %458 }
 0x290   :  { %v475_v59 = vsub.f32 %v1151_v58, %v459_v56 }
 0x292   :  { %v506_v62 = vmul.f32 1.442695, %v475_v59 }
 0x294   :  { %864 = vpow2.f32 %v506_v62  ;;  %509 = vadd.xlane.f32.xlu0 %v508_v63 }
 0x29a   :  { %v1210_v0 = vpop.eup %864 }
 0x29b   :  { %v553_v1 = vsel %vm411_vm2, %v1210_v0, 0.0 }
 0x29c   :  { %554 = vadd.xlane.f32.xlu0 %v553_v1 }
 0x2a1   :  { %701 = vrot.lane.b32.xlu2 %v986_v53, %s938_s3 }
 0x2a5   :  { %699 = vrot.lane.b32.xlu1 %v1011_v29, %s938_s3  ;;  %v472_v29 = vsub.f32 %v1111_v32, %v450_v14 }
 0x2a9   :  { %v516_v58 = vpop.xlane.xlu0 %515 }
 0x2aa   :  { %866 = vrcp.f32 %v516_v58 }
 0x2b0   :  { %v867_v49 = vpop.eup %866 }
 0x2b1   :  { %v519_v6 = vpop.xlane.xlu1 %518  ;;  %v574_v8 = vmul.f32 %v867_v49, %v1157_v3  ;;  %v500_v3 = vmul.f32 1.442695, %v472_v29 }
 0x2b2   :  { %868 = vrcp.f32 %v519_v6 }
 0x2b3   :  { %v590_v61 = vpack.c.bf16 %v574_v8, %v574_v8 }
 0x2b5   :  { %v614_v5 = vunpack.c.l.b16 %v590_v61 }
 0x2b8   :  { %v869_v10 = vpop.eup %868 }
 0x2b9   :  { %v575_v13 = vmul.f32 %v869_v10, %v1164_v11  ;;  %v522_v15 = vpop.xlane.xlu1 %521  ;;  %v502_v11 = vmul.f32 1.442695, %v473_v24 }
 0x2ba   :  { %870 = vrcp.f32 %v522_v15 }
 0x2bb   :  { %v591_v53 = vpack.c.bf16 %v575_v13, %v575_v13  ;;  %872 = vpow2.f32 %v496_v17 }
 0x2bd   :  { %v615_v19 = vunpack.c.l.b16 %v591_v53 }
 0x2bf   :  { %v621_v21 = vpack.c.b16 %v615_v19, %v614_v5 }
 0x2c0   :  { %v871_v25 = vpop.eup %870 }
 0x2c1   :  { %812 = vmatmul.msk.bf16.vlgmr.msra.gmra.mxu3 %vm411_vm2, %v621_v21  ;;  %v525_v44 = vpop.xlane.xlu0 %524  ;;  %v576_v26 = vmul.f32 %v871_v25, %v1169_v16  ;;  %v1227_v32 = vpop.eup %872 }
 0x2c2   :  { %874 = vrcp.f32 %v525_v44  ;;  %v538_v30 = vsel %vm411_vm2, %v1227_v32, 0.0 }
 0x2c3   :  { %876 = vpow2.f32 %v500_v3  ;;  %v592_v38 = vpack.c.bf16 %v576_v26, %v576_v26 }
 0x2c4   :  { %878 = vpow2.f32 %v502_v11 }
 0x2c5   :  { %880 = vpow2.f32 %v478_v48  ;;  %v616_v16 = vunpack.c.l.b16 %v592_v38 }
 0x2c6   :  { %882 = vpow2.f32 %v504_v7 }
 0x2c8   :  { %v875_v9 = vpop.eup %874 }
 0x2c9   :  { %v577_v31 = vmul.f32 %v875_v9, %v1174_v22  ;;  %v1233_v33 = vpop.eup %876  ;;  %v528_v45 = vpop.xlane.xlu2 %527 }
 0x2ca   :  { %539 = vadd.xlane.f32.xlu2 %v538_v30  ;;  %v1235_v35 = vpop.eup %878  ;;  %v544_v52 = vsel %vm411_vm2, %v1233_v33, 0.0  ;;  %884 = vrcp.f32 %v528_v45 }
 0x2cb   :  { %v593_v60 = vpack.c.bf16 %v577_v31, %v577_v31  ;;  %v547_v22 = vsel %vm411_vm2, %v1235_v35, 0.0  ;;  %v1242_v39 = vpop.eup %880 }
 0x2cc   :  { %v1244_v40 = vpop.eup %882  ;;  %v511_v41 = vsel %vm411_vm2, %v1242_v39, 0.0 }
 0x2cd   :  { %v617_v34 = vunpack.c.l.b16 %v593_v60  ;;  %v550_v42 = vsel %vm411_vm2, %v1244_v40, 0.0 }
 0x2cf   :  { %545 = vadd.xlane.f32.xlu1 %v544_v52  ;;  %v622_v36 = vpack.c.b16 %v617_v34, %v616_v16 }
 0x2d0   :  { %v885_v23 = vpop.eup %884 }
 0x2d1   :  { %813 = vmatmul.msk.bf16.gmra.mxu3 %vm411_vm2, %v622_v36  ;;  %v578_v37 = vmul.f32 %v885_v23, %v1178_v27 }
 0x2d2   :  { %548 = vadd.xlane.f32.xlu2 %v547_v22 }
 0x2d3   :  { %v594_v55 = vpack.c.bf16 %v578_v37, %v578_v37 }
 0x2d4   :  { %v698_v13 = vpop.permute.xlu0 %697 }
 0x2d5   :  { %v618_v59 = vunpack.c.l.b16 %v594_v55 }
 0x2d7   :  { %512 = vadd.xlane.f32.xlu1 %v511_v41 }
 0x2da   :  { %551 = vadd.xlane.f32.xlu2 %v550_v42 }
 0x2f7   :  { %v531_v46 = vpop.xlane.xlu1 %530 }
 0x2f8   :  { %886 = vrcp.f32 %v531_v46 }
 0x2fc   :  { %v534_v43 = vpop.xlane.xlu2 %533 }
 0x2fe   :  { %v887_v47 = vpop.eup %886 }
 0x2ff   :  { %v579_v4 = vmul.f32 %v887_v47, %v1188_v20  ;;  %v537_v1 = vpop.xlane.xlu1 %536  ;;  %v543_v15 = vpop.xlane.xlu0 %542 }
 0x300   :  { %888 = vrcp.f32 %v537_v1 }
 0x301   :  { %v595_v56 = vpack.c.bf16 %v579_v4, %v579_v4  ;;  %890 = vrcp.f32 %v534_v43 }
 0x302   :  { %892 = vrcp.f32 %v543_v15 }
 0x303   :  { %v619_v62 = vunpack.c.l.b16 %v595_v56 }
 0x304   :  { %v702_v63 = vpop.permute.xlu2 %701 }
 0x305   :  { %726 = vmatpush.bf16.msrb.mxu3 %v702_v63  ;;  %v623_v2 = vpack.c.b16 %v619_v62, %v618_v59 }
 0x306   :  { %v889_v58 = vpop.eup %888 }
 0x307   :  { %814 = vmatmul.msk.bf16.gmra.mxu3 %vm411_vm2, %v623_v2  ;;  %v891_v6 = vpop.eup %890  ;;  %v581_v27 = vmul.f32 %v889_v58, %v1193_v28  ;;  %v510_v29 = vpop.xlane.xlu0 %509 }
 0x308   :  { %v580_v49 = vmul.f32 %v891_v6, %v1195_v50  ;;  %v893_v17 = vpop.eup %892 }
 0x309   :  { %v597_v8 = vpack.c.bf16 %v581_v27, %v581_v27  ;;  %v583_v28 = vmul.f32 %v893_v17, %v1197_v51 }
 0x30a   :  { %v596_v20 = vpack.c.bf16 %v580_v49, %v580_v49 }
 0x30b   :  { %v686_v54 = vunpack.c.l.b16 %v597_v8  ;;  %v599_v3 = vpack.c.bf16 %v583_v28, %v583_v28 }
 0x30c   :  { %v685_v61 = vunpack.c.l.b16 %v596_v20 }
 0x30d   :  { %v688_v11 = vunpack.c.l.b16 %v599_v3 }
 0x30e   :  { %v693_v14 = vpack.c.b16 %v686_v54, %v685_v61 }
 0x30f   :  { %v555_v22 = vpop.xlane.xlu0 %554 }
 0x317   :  { %v700_v10 = vpop.permute.xlu1 %699 }
 0x318   :  { %727 = vmatpush.bf16.msrb.mxu3 %v700_v10 }
 0x31c   :  { %728 = vmatpush.bf16.msrb.mxu3 %v698_v13 }
 0x31f   :  { %815 = vmatmul.msk.bf16.vlgmr.msrb.gmra.mxu3 %vm411_vm2, %v693_v14 }
 0x33d   :  { %v540_v53 = vpop.xlane.xlu2 %539 }
 0x33e   :  { %894 = vrcp.f32 %v540_v53 }
 0x33f   :  { %896 = vrcp.f32 %v510_v29 }
 0x342   :  { %v546_v50 = vpop.xlane.xlu1 %545 }
 0x344   :  { %v895_v5 = vpop.eup %894  ;;  %v662_v19 = vpop.f32.mrf.mxu3 }
 0x345   :  { %752 = vst.msk [vmem:[%s1334_s2 + $0x10] sm:$0xff] %vm209_vm0, %v662_v19  ;;  %v549_v21 = vpop.xlane.xlu2 %548  ;;  %v582_v24 = vmul.f32 %v895_v5, %v1227_v32  ;;  %v897_v12 = vpop.eup %896 }
 0x346   :  { %898 = vrcp.f32 %v549_v21  ;;  %v572_v48 = vmul.f32 %v897_v12, %v1205_v57 }
 0x347   :  { %v598_v44 = vpack.c.bf16 %v582_v24, %v582_v24  ;;  %900 = vrcp.f32 %v546_v50 }
 0x348   :  { %v588_v60 = vpack.c.bf16 %v572_v48, %v572_v48 }
 0x349   :  { %v687_v25 = vunpack.c.l.b16 %v598_v44 }
 0x34a   :  { %v513_v51 = vpop.xlane.xlu1 %512  ;;  %v612_v57 = vunpack.c.l.b16 %v588_v60 }
 0x34b   :  { %902 = vrcp.f32 %v513_v51  ;;  %v694_v26 = vpack.c.b16 %v688_v11, %v687_v25 }
 0x34c   :  { %v899_v9 = vpop.eup %898  ;;  %v664_v18 = vpop.f32.mrf.mxu3 }
 0x34d   :  { %753 = vst.msk [vmem:[%s1334_s2 + $0x18] sm:$0xff] %vm209_vm0, %v664_v18  ;;  %816 = vmatmul.msk.bf16.gmra.mxu3 %vm411_vm2, %v694_v26  ;;  %v901_v32 = vpop.eup %900  ;;  %v585_v30 = vmul.f32 %v899_v9, %v1235_v35  ;;  %v552_v16 = vpop.xlane.xlu2 %551 }
 0x34e   :  { %v584_v38 = vmul.f32 %v901_v32, %v1233_v33  ;;  %904 = vrcp.f32 %v552_v16 }
 0x34f   :  { %v601_v34 = vpack.c.bf16 %v585_v30, %v585_v30  ;;  %906 = vrcp.f32 %v555_v22 }
 0x350   :  { %v600_v41 = vpack.c.bf16 %v584_v38, %v584_v38 }
 0x351   :  { %v903_v31 = vpop.eup %902  ;;  %v690_v35 = vunpack.c.l.b16 %v601_v34 }
 0x352   :  { %v573_v7 = vmul.f32 %v903_v31, %v1242_v39  ;;  %v689_v45 = vunpack.c.l.b16 %v600_v41 }
 0x354   :  { %v589_v52 = vpack.c.bf16 %v573_v7, %v573_v7  ;;  %v667_v36 = vpop.f32.mrf.mxu3  ;;  %v695_v39 = vpack.c.b16 %v690_v35, %v689_v45  ;;  %v905_v46 = vpop.eup %904 }
 0x355   :  { %754 = vst.msk [vmem:[%s1334_s2 + $0x20] sm:$0xff] %vm209_vm0, %v667_v36  ;;  %v907_v37 = vpop.eup %906  ;;  %v586_v43 = vmul.f32 %v905_v46, %v1244_v40 }
 0x356   :  { %v613_v42 = vunpack.c.l.b16 %v589_v52  ;;  %v587_v47 = vmul.f32 %v907_v37, %v1210_v0 }
 0x357   :  { %v602_v4 = vpack.c.bf16 %v586_v43, %v586_v43 }
 0x358   :  { %v620_v33 = vpack.c.b16 %v613_v42, %v612_v57  ;;  %v603_v55 = vpack.c.bf16 %v587_v47, %v587_v47 }
 0x359   :  { %v691_v56 = vunpack.c.l.b16 %v602_v4 }
 0x35a   :  { %811 = vmatmul.msk.bf16.vlgmr.msrb.gmra.mxu2 %vm411_vm2, %v620_v33  ;;  %v692_v59 = vunpack.c.l.b16 %v603_v55 }
 0x35c   :  { %v669_v23 = vpop.f32.mrf.mxu3  ;;  %v696_v62 = vpack.c.b16 %v692_v59, %v691_v56 }
 0x35d   :  { %755 = vst.msk [vmem:[%s1334_s2 + $0x28] sm:$0xff] %vm209_vm0, %v669_v23  ;;  %817 = vmatmul.msk.bf16.gmra.mxu3 %vm411_vm2, %v695_v39 }
 0x36d   :  { %818 = vmatmul.msk.bf16.gmra.mxu3 %vm411_vm2, %v696_v62 }
 0x38a   :  { %v672_v63 = vpop.f32.mrf.mxu3 }
 0x38b   :  { %756 = vst.msk [vmem:[%s1334_s2 + $0x30] sm:$0xff] %vm209_vm0, %v672_v63 }
 0x392   :  { %v674_v1 = vpop.f32.mrf.mxu3 }
 0x393   :  { %757 = vst.msk [vmem:[%s1334_s2 + $0x38] sm:$0xff] %vm209_vm0, %v674_v1 }
 0x3a2   :  { %v730_v0 = vpop.f32.mrf.mxu3 }
 0x3a3   :  { %758 = vst.msk [vmem:[%s1334_s2 + $0x40] sm:$0xff] %vm209_vm0, %v730_v0 }
 0x3aa   :  { %v732_v40 = vpop.f32.mrf.mxu3 }
 0x3ab   :  { %759 = vst.msk [vmem:[%s1334_s2 + $0x48] sm:$0xff] %vm209_vm0, %v732_v40 }
 0x3d0   :  { %v735_v2 = vpop.f32.mrf.mxu3 }
 0x3d1   :  { %760 = vst.msk [vmem:[%s1334_s2 + $0x50] sm:$0xff] %vm209_vm0, %v735_v2 }
 0x3d8   :  { %v737_v58 = vpop.f32.mrf.mxu3 }
 0x3d9   :  { %761 = vst.msk [vmem:[%s1334_s2 + $0x58] sm:$0xff] %vm209_vm0, %v737_v58 }
 0x3dd   :  { %v657_v6 = vpop.f32.mrf.mxu2 }
 0x3de   :  { %750 = vst.msk [vmem:[%s1334_s2] sm:$0xff] %vm209_vm0, %v657_v6 }
 0x3e0   :  { %v740_v27 = vpop.f32.mrf.mxu3 }
 0x3e1   :  { %762 = vst.msk [vmem:[%s1334_s2 + $0x60] sm:$0xff] %vm209_vm0, %v740_v27 }
 0x3e5   :  { %v659_v49 = vpop.f32.mrf.mxu2 }
 0x3e6   :  { %751 = vst.msk [vmem:[%s1334_s2 + $0x8] sm:$0xff] %vm209_vm0, %v659_v49 }
 0x3e8   :  { %v742_v8 = vpop.f32.mrf.mxu3 }
 0x3e9   :  { %763 = vst.msk [vmem:[%s1334_s2 + $0x68] sm:$0xff] %vm209_vm0, %v742_v8 }
 0x3f0   :  { %v745_v20 = vpop.f32.mrf.mxu3 }
 0x3f1   :  { %764 = vst.msk [vmem:[%s1334_s2 + $0x70] sm:$0xff] %vm209_vm0, %v745_v20 }
 0x3f8   :  { %v747_v10 = vpop.f32.mrf.mxu3 }
 0x3f9   :  { %765 = vst.msk [vmem:[%s1334_s2 + $0x78] sm:$0xff] %vm209_vm0, %v747_v10 }
 0x3fa   :  { %770 = vsyncpa [#allocation3], 1 }

</bundles_post_ra>
